<compile_context>
chip_gen: v7x
topology: tpu7x:2x2x1
jax: 0.10.0
libtpu: 0.0.40
codegen_flags: <defaults>
</compile_context>

<pallas_src>
import jax
import jax.numpy as jnp
from jax.experimental import pallas as pl
from jax.experimental.pallas import tpu as pltpu


def se_block_kernel(x_ref, w1t_ref, w2t_ref, o_ref):
    # x_ref  : (Bb, HW, C)   batch tile, channels on lanes (lane-dense)
    # w1t_ref: (C,  Cr)      W1^T  (first Linear, PyTorch weight transposed)
    # w2t_ref: (Cr, C)       W2^T  (second Linear, transposed)
    # o_ref  : (Bb, HW, C)
    xf = x_ref[...].astype(jnp.float32)                       # (Bb, HW, C)

    # --- squeeze: global average pool over spatial (sublane reduction) ---
    y = jnp.mean(xf, axis=1)                                  # (Bb, C)

    # --- excitation: fc -> relu -> fc -> sigmoid (lane-dense matmuls) ---
    h = jnp.dot(y, w1t_ref[...], preferred_element_type=jnp.float32)   # (Bb, Cr)
    h = jnp.maximum(h, 0.0)
    s = jnp.dot(h, w2t_ref[...], preferred_element_type=jnp.float32)   # (Bb, C)
    s = jax.nn.sigmoid(s)

    # --- scale: broadcast per-channel weight over spatial (sublanes) ---
    o_ref[...] = (xf * s[:, None, :]).astype(o_ref.dtype)


def _choose_bb(B, HW, C, itemsize):
    """Largest per-step batch tile that (a) double-buffers in VMEM with
    headroom on v7x (64 MiB physical), (b) keeps >=2 grid steps when B>=2
    so both v7x TensorCores get work, and (c) divides B evenly."""
    budget = 28 * 1024 * 1024                 # bytes for 2 in + 2 out buffers
    per_elem = 4 * HW * C * itemsize          # double-buffered in + out
    max_fit = max(1, budget // per_elem)
    cap = max(1, B // 2) if B >= 2 else 1     # keep >=2 parallel steps
    bb = int(min(B, max_fit, cap))
    while B % bb:                             # avoid ragged trailing block
        bb -= 1
    return bb


def se_block(x_nchw, w1, w2):
    """x_nchw: (B, C, H, W); w1: (C//r, C); w2: (C, C//r) (PyTorch layout)."""
    B, C, H, W = x_nchw.shape
    HW = H * W

    # Lane-dense layout: channels on lanes.
    x = jnp.transpose(x_nchw.reshape(B, C, HW), (0, 2, 1))    # (B, HW, C)
    w1t = jnp.transpose(w1)                                   # (C,  Cr)
    w2t = jnp.transpose(w2)                                   # (Cr, C)

    Bb = _choose_bb(B, HW, C, x.dtype.itemsize)
    grid = (B // Bb,)

    out = pl.pallas_call(
        se_block_kernel,
        out_shape=jax.ShapeDtypeStruct((B, HW, C), x.dtype),
        grid_spec=pltpu.PrefetchScalarGridSpec(
            num_scalar_prefetch=0,
            grid=grid,
            in_specs=[
                pl.BlockSpec((Bb, HW, C), lambda b: (b, 0, 0)),
                pl.BlockSpec((w1t.shape[0], w1t.shape[1]), lambda b: (0, 0)),
                pl.BlockSpec((w2t.shape[0], w2t.shape[1]), lambda b: (0, 0)),
            ],
            out_specs=pl.BlockSpec((Bb, HW, C), lambda b: (b, 0, 0)),
        ),
        compiler_params=pltpu.CompilerParams(
            dimension_semantics=("parallel",),
            vmem_limit_bytes=48 * 1024 * 1024,
        ),
    )(x, w1t, w2t)

    return jnp.transpose(out, (0, 2, 1)).reshape(B, C, H, W)


def se_block_ref(x, w1, w2):
    """Pure-JAX reference mirroring the PyTorch forward."""
    y = jnp.mean(x, axis=(2, 3))                   # (B, C)  global avg pool
    h = jnp.maximum(y @ w1.T, 0.0)                 # Linear(C -> C//r), ReLU
    s = jax.nn.sigmoid(h @ w2.T)                   # Linear(C//r -> C), Sigmoid
    return x * s[:, :, None, None]


if __name__ == "__main__":
    # Small shapes consistent with the module: se == (H, W) so the pooled
    # output is (B, C, 1, 1) and .view(b, c) is valid.
    B, C, H, W = 2, 32, 8, 8
    reduction = 4
    Cr = C // reduction

    key = jax.random.PRNGKey(0)
    kx, k1, k2 = jax.random.split(key, 3)
    x = jax.random.normal(kx, (B, C, H, W), dtype=jnp.float32)
    # PyTorch Linear layout: (out_features, in_features), bias=False.
    w1 = jax.random.normal(k1, (Cr, C), dtype=jnp.float32) * 0.1
    w2 = jax.random.normal(k2, (C, Cr), dtype=jnp.float32) * 0.1

    out = se_block(x, w1, w2)
    jax.block_until_ready(out)

    ref = se_block_ref(x, w1, w2)
    assert out.shape == (B, C, H, W)
    assert jnp.allclose(out, ref, atol=1e-5, rtol=1e-5)
    print("KERNEL_OK")
</pallas_src>

<mosaic_0001>
module attributes {stable_mosaic.version = 11 : i64} {
  func.func @se_block_kernel(%arg0: i32, %arg1: memref<1x64x32xf32, #tpu.memory_space<vmem>>, %arg2: memref<32x8xf32, #tpu.memory_space<vmem>>, %arg3: memref<8x32xf32, #tpu.memory_space<vmem>>, %arg4: memref<1x64x32xf32, #tpu.memory_space<vmem>>) attributes {dimension_semantics = [#tpu.dimension_semantics<parallel>], iteration_bounds = array<i64: 2>, scalar_prefetch = 0 : i64, scratch_operands = 0 : i64, tpu.core_type = #tpu.core_type<tc>, window_params = [{transform_indices = @transform_0, window_bounds = array<i64: 1, 64, 32>}, {pipeline_mode = #tpu.pipeline_mode<synchronous>, transform_indices = @transform_1, window_bounds = array<i64: 32, 8>}, {pipeline_mode = #tpu.pipeline_mode<synchronous>, transform_indices = @transform_2, window_bounds = array<i64: 8, 32>}, {transform_indices = @transform_3, window_bounds = array<i64: 1, 64, 32>}]} {
    %c0 = arith.constant 0 : index
    %c0_0 = arith.constant 0 : index
    %c0_1 = arith.constant 0 : index
    %0 = vector.load %arg1[%c0, %c0_0, %c0_1] : memref<1x64x32xf32, #tpu.memory_space<vmem>>, vector<1x64x32xf32>
    %cst = arith.constant dense<0.000000e+00> : vector<1x32xf32>
    %1 = vector.multi_reduction <add>, %0, %cst [1] : vector<1x64x32xf32> to vector<1x32xf32>
    %cst_2 = arith.constant 6.400000e+01 : f32
    %2 = vector.broadcast %cst_2 : f32 to vector<1x32xf32>
    %3 = arith.divf %1, %2 : vector<1x32xf32>
    %c0_3 = arith.constant 0 : index
    %c0_4 = arith.constant 0 : index
    %4 = vector.load %arg2[%c0_3, %c0_4] : memref<32x8xf32, #tpu.memory_space<vmem>>, vector<32x8xf32>
    %cst_5 = arith.constant dense<0.000000e+00> : vector<1x8xf32>
    %5 = tpu.matmul %3, %4, %cst_5 {dimension_numbers = #tpu.dot_dimension_numbers<[1], [0], [0], [1], [0, 0, 1, 1], [], []>} : vector<1x32xf32>, vector<32x8xf32>, vector<1x8xf32> -> vector<1x8xf32>
    %cst_6 = arith.constant 0.000000e+00 : f32
    %6 = vector.broadcast %cst_6 : f32 to vector<1x8xf32>
    %7 = arith.maximumf %5, %6 : vector<1x8xf32>
    %c0_7 = arith.constant 0 : index
    %c0_8 = arith.constant 0 : index
    %8 = vector.load %arg3[%c0_7, %c0_8] : memref<8x32xf32, #tpu.memory_space<vmem>>, vector<8x32xf32>
    %cst_9 = arith.constant dense<0.000000e+00> : vector<1x32xf32>
    %9 = tpu.matmul %7, %8, %cst_9 {dimension_numbers = #tpu.dot_dimension_numbers<[1], [0], [0], [1], [0, 0, 1, 1], [], []>} : vector<1x8xf32>, vector<8x32xf32>, vector<1x32xf32> -> vector<1x32xf32>
    %10 = arith.negf %9 : vector<1x32xf32>
    %11 = math.exp %10 : vector<1x32xf32>
    %cst_10 = arith.constant 1.000000e+00 : f32
    %12 = vector.broadcast %cst_10 : f32 to vector<1x32xf32>
    %13 = arith.addf %12, %11 : vector<1x32xf32>
    %14 = arith.divf %12, %13 : vector<1x32xf32>
    %15 = vector.shape_cast %14 : vector<1x32xf32> to vector<1x1x32xf32>
    %16 = vector.broadcast %15 : vector<1x1x32xf32> to vector<1x64x32xf32>
    %17 = arith.mulf %0, %16 : vector<1x64x32xf32>
    %c0_11 = arith.constant 0 : index
    %c0_12 = arith.constant 0 : index
    %c0_13 = arith.constant 0 : index
    %18 = vector.load %arg4[%c0_11, %c0_12, %c0_13] : memref<1x64x32xf32, #tpu.memory_space<vmem>>, vector<1x64x32xf32>
    tpu.vector_store %arg4[%c0_11, %c0_12, %c0_13], %17 {strides = array<i32>} : memref<1x64x32xf32, #tpu.memory_space<vmem>>, vector<1x64x32xf32>,
    return
  }
  func.func @transform_0(%arg0: i32) -> (i32, i32, i32) {
    %c0_i32 = arith.constant 0 : i32
    %c0_i32_0 = arith.constant 0 : i32
    %c0_i32_1 = arith.constant 0 : i32
    return %arg0, %c0_i32, %c0_i32_0 : i32, i32, i32
  }
  func.func @transform_1(%arg0: i32) -> (i32, i32) {
    %c0_i32 = arith.constant 0 : i32
    %c0_i32_0 = arith.constant 0 : i32
    %c0_i32_1 = arith.constant 0 : i32
    return %c0_i32, %c0_i32_0 : i32, i32
  }
  func.func @transform_2(%arg0: i32) -> (i32, i32) {
    %c0_i32 = arith.constant 0 : i32
    %c0_i32_0 = arith.constant 0 : i32
    %c0_i32_1 = arith.constant 0 : i32
    return %c0_i32, %c0_i32_0 : i32, i32
  }
  func.func @transform_3(%arg0: i32) -> (i32, i32, i32) {
    %c0_i32 = arith.constant 0 : i32
    %c0_i32_0 = arith.constant 0 : i32
    %c0_i32_1 = arith.constant 0 : i32
    return %arg0, %c0_i32, %c0_i32_0 : i32, i32, i32
  }
}

</mosaic_0001>

<bundles_post_ra>
// kernel: tpu_custom_call.1
= control target key start
LH: loop header
LB: loop body
LE: loop exit
PB: predicated region body
PF: predicated region fallthrough
CT: control target
= control target key end

     0   :  { %s528_s12 = smov 0   ;;  %s584_s0 = inlined_call_operand.vmem [shape: f32[2,64,32], index: 0, kind: input, shape index: {}]   ;;  %s585_s1 = inlined_call_operand.vmem [shape: f32[32,8], index: 1, kind: input, shape index: {}]   ;;  %s586_s2 = inlined_call_operand.vmem [shape: f32[8,32], index: 2, kind: input, shape index: {}]   ;;  %s587_s3 = inlined_call_operand.vmem [shape: f32[2,64,32], index: 3, kind: output, shape index: {}]  }
   0x1 LB: > { %s437_s13 = sadd.s32 4294967295, %s503_s12   ;;  %p441_p0 = scmp.ge.s32.totalorder %s503_s12, 1  ;;  %s503_s12 = sphi %s528_s12, %s13_s12  }
   0x2   : > { %p137_p1 = scmp.lt.s32.totalorder %s503_s12, 3 }
   0x4   : > { %p138_p2 = pnand %p441_p0, %p137_p1 }
   0x5   : > { %v203_v0 = vld [vmem:[%s585_s1] sm:$0xff] (!%p138_p2)  ;;  %v204_v1 = vld [vmem:[%s585_s1 + $0x8] sm:$0xff] (!%p138_p2)  ;;  %v205_v2 = vld [vmem:[%s585_s1 + $0x10] sm:$0xff] (!%p138_p2)  ;;  %v505_v3 = vmov (!%p138_p2), 0.0|0.0   ;;  %vm506_vm0 = vmmov (!%p138_p2), 0   ;;  %v507_v6 = vmov (!%p138_p2), 0.0   ;;  %v362_v47 = vlaneseq (!%p138_p2) }
   0x6   : > { %141 = sbr.rel (%p138_p2) target bundleno = 506 (0x1fa), region = 32  ;;  %476 = vmatprep.subr.bf16.mxu0 (!%p138_p2), %v505_v3  ;;  %v477_v4 = vpack.c.bf16 (!%p138_p2), %v204_v1, %v203_v0  ;;  %v206_v5 = vld [vmem:[%s585_s1 + $0x18] sm:$0xff] (!%p138_p2)  ;;  %468 = vmatprep.mubr.msk.f32.mxu0 (!%p138_p2), %vm506_vm0, %v507_v6  ;;  %p161_p3 = scmp.lt.s32.totalorder (!%p138_p2), %s437_s13, 1  ;;  %vm179_vm1 = vcmask (!%p138_p2), 261120   ;;  %v281_v38 = vld [vmem:[%s586_s2] sm:$0xff] (!%p138_p2)  ;;  %vm282_vm2 = vcmask (!%p138_p2), 64512  }
   0x7   : > { %471 = vmatprep.subr.mxu1 (!%p138_p2), %v507_v6  ;;  %473 = vmatprep.mubr.msk.f32.mxu1 (!%p138_p2), %vm506_vm0, %v507_v6  ;;  %v480_v7 = vpack.c.bf16 (!%p138_p2), %v206_v5, %v205_v2  ;;  %v363_v48 = vshrl.u32 (!%p138_p2), %v362_v47, 7 }
   0x8   : > { %478 = vmatpush3.bf16.msra.mxu0 (!%p138_p2), %v477_v4  ;;  %472 = vmatpush3.msra.mxu1 (!%p138_p2), %v281_v38 }
   0x9   : > { %479 = vmatprep.subr.bf16.mxu0 (!%p138_p2), %v505_v3  ;;  %v364_v49 = vsub.s32 (!%p138_p2), 0, %v363_v48 }
   0xc   : > { %481 = vmatpush3.bf16.msra.mxu0 (!%p138_p2), %v480_v7 }
   0xd   : > { %s589_s13 = smov (!%p161_p3, %s437_s13), 1 }
   0xe   : > { %s451_s22 = sshll.u32 %s589_s13, 6 }
   0xf   : > { %s165_s25 = scalar_lea.vmem %s584_s0, %s451_s22  ;;  %s170_s30 = scalar_lea.vmem %s587_s3, %s451_s22 }
  0x10   : > { %v171_v8 = vld [vmem:[%s165_s25] sm:$0xff]  ;;  %v172_v9 = vld [vmem:[%s165_s25 + $0x8] sm:$0xff]  ;;  %v173_v10 = vld [vmem:[%s165_s25 + $0x10] sm:$0xff] }
  0x11   : > { %v174_v11 = vld [vmem:[%s165_s25 + $0x18] sm:$0xff]  ;;  %v180_v12 = vsel %vm179_vm1, %v171_v8, 0.0  ;;  %v181_v13 = vsel %vm179_vm1, %v172_v9, 0.0  ;;  %v183_v14 = vsel %vm179_vm1, %v173_v10, 0.0  ;;  %v175_v15 = vld [vmem:[%s165_s25 + $0x20] sm:$0xff]  ;;  %v176_v18 = vld [vmem:[%s165_s25 + $0x28] sm:$0xff] }
  0x12   : > { %v182_v16 = vadd.f32 %v181_v13, %v180_v12  ;;  %v185_v17 = vsel %vm179_vm1, %v174_v11, 0.0  ;;  %v187_v20 = vsel %vm179_vm1, %v175_v15, 0.0  ;;  %v177_v21 = vld [vmem:[%s165_s25 + $0x30] sm:$0xff]  ;;  %v189_v23 = vsel %vm179_vm1, %v176_v18, 0.0  ;;  %v178_v24 = vld [vmem:[%s165_s25 + $0x38] sm:$0xff] }
  0x13   : > { %v191_v26 = vsel %vm179_vm1, %v177_v21, 0.0  ;;  %v193_v28 = vsel %vm179_vm1, %v178_v24, 0.0 }
  0x14   : > { %v184_v19 = vadd.f32 %v183_v14, %v182_v16 }
  0x16   : > { %v186_v22 = vadd.f32 %v185_v17, %v184_v19 }
  0x18   : > { %v188_v25 = vadd.f32 %v187_v20, %v186_v22 }
  0x1a   : > { %v190_v27 = vadd.f32 %v189_v23, %v188_v25 }
  0x1c   : > { %v192_v29 = vadd.f32 %v191_v26, %v190_v27 }
  0x1e   : > { %v194_v30 = vadd.f32 %v193_v28, %v192_v29 }
  0x20   : > { %v195_v31 = vrot.slane %v194_v30, 4 }
  0x22   : > { %v196_v32 = vadd.f32 %v195_v31, %v194_v30 }
  0x24   : > { %v197_v33 = vrot.slane %v196_v32, 2 }
  0x26   : > { %v198_v34 = vadd.f32 %v197_v33, %v196_v32 }
  0x28   : > { %v199_v35 = vrot.slane %v198_v34, 1 }
  0x2a   : > { %v200_v36 = vadd.f32 %v199_v35, %v198_v34 }
  0x2c   : > { %v202_v37 = vmul.f32 0.015625, %v200_v36 }
  0x2e   : > { %469 = vmatmul.mubr.msk.f32.vlgmr.msra.gmra.mrb[0].mxu0 %vm179_vm1, %v202_v37 }
 0x101   : > { %v276_v39 = vpop.f32.mrb[0].mxu0 }
 0x102   : > { %v280_v40 = vmax.f32 %v276_v39, 0.0  ;;  %v470_v41 = vpop.f32.mrb[1].mxu0 }
 0x104   : > { %474 = vmatmul.mubr.msk.f32.vlgmr.msra.gmra.mrb[0].mxu1 %vm282_vm2, %v280_v40 }
 0x1d7   : > { %v352_v42 = vpop.f32.mrb[0].mxu1 }
 0x1d8   : > { %v448_v43 = vmul.f32 -1.442695, %v352_v42  ;;  %v475_v44 = vpop.f32.mrb[1].mxu1 }
 0x1da   : > { %493 = vpow2.f32 %v448_v43 }
 0x1e4   : > { %v494_v45 = vpop.eup %493 }
 0x1e5   : > { %v359_v46 = vadd.f32 1.0, %v494_v45 }
 0x1e7   : > { %495 = vrcp.f32 %v359_v46 }
 0x1f1   : > { %v496_v50 = vpop.eup %495 }
 0x1f2   : > { %v365_v51 = vrot.slane %v496_v50, %v364_v49 }
 0x1f4   : > { %v366_v52 = vmul.f32 %v365_v51, %v171_v8  ;;  %v367_v53 = vmul.f32 %v365_v51, %v172_v9  ;;  %v368_v54 = vmul.f32 %v365_v51, %v173_v10  ;;  %v369_v55 = vmul.f32 %v365_v51, %v174_v11 }
 0x1f5   : > { %v370_v56 = vmul.f32 %v365_v51, %v175_v15  ;;  %v371_v57 = vmul.f32 %v365_v51, %v176_v18  ;;  %v372_v58 = vmul.f32 %v365_v51, %v177_v21  ;;  %v373_v59 = vmul.f32 %v365_v51, %v178_v24 }
 0x1f6   : > { %374 = vst.msk [vmem:[%s170_s30] sm:$0xff] %vm179_vm1, %v366_v52  ;;  %375 = vst.msk [vmem:[%s170_s30 + $0x8] sm:$0xff] %vm179_vm1, %v367_v53 }
 0x1f7   : > { %376 = vst.msk [vmem:[%s170_s30 + $0x10] sm:$0xff] %vm179_vm1, %v368_v54  ;;  %377 = vst.msk [vmem:[%s170_s30 + $0x18] sm:$0xff] %vm179_vm1, %v369_v55 }
 0x1f8   : > { %378 = vst.msk [vmem:[%s170_s30 + $0x20] sm:$0xff] %vm179_vm1, %v370_v56  ;;  %379 = vst.msk [vmem:[%s170_s30 + $0x28] sm:$0xff] %vm179_vm1, %v371_v57 }
 0x1f9   : > { %380 = vst.msk [vmem:[%s170_s30 + $0x30] sm:$0xff] %vm179_vm1, %v372_v58  ;;  %381 = vst.msk [vmem:[%s170_s30 + $0x38] sm:$0xff] %vm179_vm1, %v373_v59 }
 0x1fa PF: > { %s13_s12 = sadd.s32 1, %s503_s12  }
 0x1fb   : > { %p10_p4 = scmp.ge.s32.totalorder %s13_s12, 4  }
 0x1fd   :  { %12 = sbr.rel (!%p10_p4) target bundleno = 1 (0x1), region = 62 }

</bundles_post_ra>
